<compile_context>
chip_gen: v6e
topology: v6e:2x2x1
jax: 0.10.0
libtpu: 0.0.40
codegen_flags: <defaults>
</compile_context>

<pallas_src>
import math

import jax
import jax.numpy as jnp
from jax import lax
from jax.experimental import pallas as pl
from jax.experimental.pallas import tpu as pltpu


def _round_up(a, m):
    return (a + m - 1) // m * m


# Rows processed per pooling sub-chunk (keeps ~SBP live vregs for the x slice;
# D < 128 means each batch row costs a whole lane-padded vreg).
_POOL_ROWS = 32
# Rows per fc-head sub-chunk (MXU LHS M; 256 fills the v6e/v7x 256x256 array).
_HEAD_ROWS = 256


def fully_connected_kernel(x_ref, wa_ref, w1_ref, b1_ref, w2_ref, b2_ref,
                           w3_ref, b3_ref, out_ref, feats_ref):
    TB, T, D = x_ref.shape
    OUT = out_ref.shape[-1]
    inv_t = 1.0 / T                                   # compile-time constant

    wa = wa_ref[...].astype(jnp.float32).reshape(1, 1, D)      # (1,1,D)

    # ---- Phase A: pooled features per small row chunk (VPU + XLU only; no
    #      degenerate MXU pushes, bounded vreg live ranges). -------------------
    SBP = min(TB, _POOL_ROWS)          # TB is a multiple of SBP by construction
    n_pool = TB // SBP

    def pool_body(i, carry):
        rs = pl.multiple_of(i * SBP, SBP)
        xs = x_ref[pl.ds(rs, SBP), :, :].astype(jnp.float32)   # (SBP, T, D)

        # attention scores: VPU multiply + lane reduce over D.
        # (attention bias omitted: adding a scalar is softmax-invariant.)
        s = jnp.sum(xs * wa, axis=-1)                          # (SBP, T)
        m = jnp.max(s, axis=-1, keepdims=True)
        e = jnp.exp(s - m)
        p = e * pl.reciprocal(jnp.sum(e, axis=-1, keepdims=True), approx=True)

        attn_pool = jnp.sum(p[:, :, None] * xs, axis=1)        # (SBP, D)
        max_pool = jnp.max(xs, axis=1)                         # (SBP, D)
        avg_pool = jnp.sum(xs, axis=1) * inv_t                 # (SBP, D)

        feats_ref[pl.ds(rs, SBP), :] = jnp.concatenate(
            [attn_pool, max_pool, avg_pool], axis=-1)          # (SBP, 3D)
        return carry

    lax.fori_loop(0, n_pool, pool_body, 0, unroll=(n_pool <= 8))

    # ---- Phase B: fc head on large row chunks (big MXU M). ------------------
    # Dropout layers are identity in inference mode.
    SBM = min(TB, _HEAD_ROWS)
    n_head = TB // SBM

    def head_body(i, carry):
        rs = pl.multiple_of(i * SBM, SBM)
        f = feats_ref[pl.ds(rs, SBM), :]                       # (SBM, 3D)
        h = jnp.dot(f, w1_ref[...], preferred_element_type=jnp.float32) + b1_ref[...]
        h = jnp.maximum(h, 0.0)                                # ReLU (+Dropout=id)
        h = jnp.dot(h, w2_ref[...], preferred_element_type=jnp.float32) + b2_ref[...]
        h = jnp.maximum(h, 0.0)                                # ReLU (+Dropout=id)
        o = jnp.dot(h, w3_ref[...], preferred_element_type=jnp.float32) + b3_ref[...]
        # Store only the real OUT columns: HBM writeback stays narrow.
        out_ref[pl.ds(rs, SBM), :] = o[:, :OUT].astype(out_ref.dtype)
        return carry

    lax.fori_loop(0, n_head, head_body, 0, unroll=(n_head <= 8))


def _choose_batch_tile(B, row_bytes_padded, budget_bytes):
    """Largest batch tile whose double-buffered, lane-padded x footprint fits."""
    b8 = _round_up(B, 8)
    tb = min(b8, _POOL_ROWS)
    for cand in (1024, 512, 256, 128, 64, 32):        # multiples of _POOL_ROWS
        if cand > b8:
            continue
        if 2 * cand * row_bytes_padded > budget_bytes:
            continue
        # v7x megacore: keep >= 2 batch tiles so both TensorCores get work.
        if cand > _POOL_ROWS and pl.cdiv(B, cand) < 2:
            continue
        tb = cand
        break
    # Safety clamp for extreme T*D (keeps double-buffered x under budget).
    while tb > 8 and 2 * tb * row_bytes_padded > budget_bytes:
        tb = _round_up(tb // 2, 8)
    return tb


def fully_connected(x, params):
    """x: (B, T, D) -> (B, output_size) float32."""
    B, T, D = x.shape
    L1 = params["b1"].shape[-1]
    L2 = params["b2"].shape[-1]
    OUT = params["b3"].shape[-1]

    # Lane-dense padding of the head weights (zero rows/cols are exact no-ops).
    L1P, L2P, OUTP = (_round_up(v, 128) for v in (L1, L2, OUT))

    def pad2(a, rows, cols):
        return jnp.pad(a, ((0, rows - a.shape[0]), (0, cols - a.shape[1])))

    wa = params["wa"]                                           # (1, D)
    # Attention bias (params["ba"]) dropped: softmax-invariant scalar add.
    w1 = pad2(jnp.concatenate([params["w1a"], params["w1b"], params["w1c"]],
                              axis=0), 3 * D, L1P)              # (3D, L1P) fused
    b1 = pad2(params["b1"], 1, L1P)
    w2 = pad2(params["w2"], L1P, L2P)
    b2 = pad2(params["b2"], 1, L2P)
    w3 = pad2(params["w3"], L2P, OUTP)
    b3 = pad2(params["b3"], 1, OUTP)

    # Batch tile from the *lane-padded* VMEM footprint of an x tile (last dim
    # tiles to 128 lanes, second-to-last to 8 sublanes), double-buffered.
    itemsize = jnp.dtype(x.dtype).itemsize
    row_bytes = _round_up(T, 8) * _round_up(D, 128) * itemsize
    X_BUDGET = 16 << 20            # <= 8 MiB per x buffer; fits v5e/v6e/v7x
    tb = _choose_batch_tile(B, row_bytes, X_BUDGET)
    grid = (pl.cdiv(B, tb),)       # ragged last block; no wrapper pad of x

    def resident(shape):           # weights: same block at every grid step
        return pl.BlockSpec(shape, lambda i, _s=shape: (0,) * len(_s))

    out = pl.pallas_call(
        fully_connected_kernel,
        out_shape=jax.ShapeDtypeStruct((B, OUT), jnp.float32),
        grid_spec=pltpu.PrefetchScalarGridSpec(
            num_scalar_prefetch=0,
            grid=grid,
            in_specs=[
                pl.BlockSpec((tb, T, D), lambda i: (i, 0, 0)),   # x tile
                resident((1, D)),                                # wa
                resident((3 * D, L1P)), resident((1, L1P)),      # W1, b1 (fused)
                resident((L1P, L2P)), resident((1, L2P)),        # W2, b2
                resident((L2P, OUTP)), resident((1, OUTP)),      # W3, b3
            ],
            out_specs=pl.BlockSpec((tb, OUT), lambda i: (i, 0)), # narrow HBM write
            scratch_shapes=[pltpu.VMEM((tb, 3 * D), jnp.float32)],
        ),
        compiler_params=pltpu.CompilerParams(
            dimension_semantics=("parallel",),     # batch tiles over v7x's 2 TCs
            vmem_limit_bytes=32 * 1024 * 1024,
        ),
    )(x, wa, w1, b1, w2, b2, w3, b3)
    return out


def fully_connected_ref(x, params):
    """Pure-JAX reference of the same forward pass (for a correctness check)."""
    scores = jnp.einsum('btd,od->bt', x, params["wa"]) + params["ba"][0, 0]
    p = jax.nn.softmax(scores, axis=1)
    attn_pool = jnp.einsum('bt,btd->bd', p, x)
    max_pool = jnp.max(x, axis=1)
    avg_pool = jnp.mean(x, axis=1)
    feats = jnp.concatenate([attn_pool, max_pool, avg_pool], axis=1)
    W1 = jnp.concatenate([params["w1a"], params["w1b"], params["w1c"]], axis=0)
    h = jax.nn.relu(feats @ W1 + params["b1"])
    h = jax.nn.relu(h @ params["w2"] + params["b2"])
    return h @ params["w3"] + params["b3"]


def init_params(key, lstm_out=16, linear_out1=64, linear_out2=32, output_size=4):
    """Deterministic synthetic parameters matching the module's shapes.

    Weights are stored transposed relative to PyTorch (as (in, out)) so the
    kernel can do plain `x @ W`.
    """
    D = 2 * lstm_out
    ks = jax.random.split(key, 8)

    def u(k, shape, fan_in):
        bound = 1.0 / math.sqrt(fan_in)
        return jax.random.uniform(k, shape, jnp.float32, -bound, bound)

    wa = u(ks[0], (1, D), D)                       # attentionLinear.weight (1, D)
    ba = u(ks[1], (1, 1), D)                       # attentionLinear.bias
    W1 = u(ks[2], (3 * D, linear_out1), 3 * D)     # fc[0]: Linear(3D, L1), (in, out)
    b1 = u(ks[3], (1, linear_out1), 3 * D)
    W2 = u(ks[4], (linear_out1, linear_out2), linear_out1)   # fc[3]
    b2 = u(ks[5], (1, linear_out2), linear_out1)
    W3 = u(ks[6], (linear_out2, output_size), linear_out2)   # fc[6]
    b3 = u(ks[7], (1, output_size), linear_out2)

    # split W1 to match cat order [attn_pool, max_pool, avg_pool]
    return {
        "wa": wa, "ba": ba,
        "w1a": W1[:D], "w1b": W1[D:2 * D], "w1c": W1[2 * D:], "b1": b1,
        "w2": W2, "b2": b2,
        "w3": W3, "b3": b3,
    }


if __name__ == "__main__":
    key = jax.random.PRNGKey(0)
    kx, kp = jax.random.split(key)

    B, T, lstm_out = 2, 8, 16            # -> D = 2*lstm_out = 32
    linear_out1, linear_out2, output_size = 64, 32, 4
    D = 2 * lstm_out

    x = jax.random.normal(kx, (B, T, D), jnp.float32)
    params = init_params(kp, lstm_out=lstm_out, linear_out1=linear_out1,
                         linear_out2=linear_out2, output_size=output_size)

    out = fully_connected(x, params)
    jax.block_until_ready(out)
    assert out.shape == (B, output_size), out.shape

    ref = fully_connected_ref(x, params)
    # Tolerance loosened slightly vs exact f32: pl.reciprocal(approx=True) is
    # used for the softmax normalisation (EUP approximate reciprocal).
    assert jnp.allclose(out, ref, atol=1e-3, rtol=1e-3), \
        float(jnp.max(jnp.abs(out - ref)))
    print("KERNEL_OK")
</pallas_src>

<mosaic_0001>
module attributes {stable_mosaic.version = 11 : i64} {
  func.func @fully_connected_kernel(%arg0: i32, %arg1: memref<8x8x32xf32, #tpu.memory_space<vmem>>, %arg2: memref<1x32xf32, #tpu.memory_space<vmem>>, %arg3: memref<96x128xf32, #tpu.memory_space<vmem>>, %arg4: memref<1x128xf32, #tpu.memory_space<vmem>>, %arg5: memref<128x128xf32, #tpu.memory_space<vmem>>, %arg6: memref<1x128xf32, #tpu.memory_space<vmem>>, %arg7: memref<128x128xf32, #tpu.memory_space<vmem>>, %arg8: memref<1x128xf32, #tpu.memory_space<vmem>>, %arg9: memref<8x4xf32, #tpu.memory_space<vmem>>, %arg10: memref<8x96xf32, #tpu.memory_space<vmem>>) attributes {dimension_semantics = [#tpu.dimension_semantics<parallel>], iteration_bounds = array<i64: 1>, scalar_prefetch = 0 : i64, scratch_operands = 1 : i64, tpu.core_type = #tpu.core_type<tc>, window_params = [{transform_indices = @transform_0, window_bounds = array<i64: 8, 8, 32>}, {pipeline_mode = #tpu.pipeline_mode<synchronous>, transform_indices = @transform_1, window_bounds = array<i64: 1, 32>}, {pipeline_mode = #tpu.pipeline_mode<synchronous>, transform_indices = @transform_2, window_bounds = array<i64: 96, 128>}, {pipeline_mode = #tpu.pipeline_mode<synchronous>, transform_indices = @transform_3, window_bounds = array<i64: 1, 128>}, {pipeline_mode = #tpu.pipeline_mode<synchronous>, transform_indices = @transform_4, window_bounds = array<i64: 128, 128>}, {pipeline_mode = #tpu.pipeline_mode<synchronous>, transform_indices = @transform_5, window_bounds = array<i64: 1, 128>}, {pipeline_mode = #tpu.pipeline_mode<synchronous>, transform_indices = @transform_6, window_bounds = array<i64: 128, 128>}, {pipeline_mode = #tpu.pipeline_mode<synchronous>, transform_indices = @transform_7, window_bounds = array<i64: 1, 128>}, {transform_indices = @transform_8, window_bounds = array<i64: 8, 4>}]} {
    %c0 = arith.constant 0 : index
    %c0_0 = arith.constant 0 : index
    %0 = vector.load %arg2[%c0, %c0_0] : memref<1x32xf32, #tpu.memory_space<vmem>>, vector<1x32xf32>
    %1 = vector.shape_cast %0 : vector<1x32xf32> to vector<1x1x32xf32>
    %c0_i32 = arith.constant 0 : i32
    %c8_i32 = arith.constant 8 : i32
    %2 = arith.muli %c0_i32, %c8_i32 : i32
    %3 = tpu.assume_multiple %2, 8 : i32
    %4 = arith.index_cast %3 : i32 to index
    %c0_1 = arith.constant 0 : index
    %c0_2 = arith.constant 0 : index
    %5 = vector.load %arg1[%4, %c0_1, %c0_2] : memref<8x8x32xf32, #tpu.memory_space<vmem>>, vector<8x8x32xf32>
    %6 = vector.broadcast %1 : vector<1x1x32xf32> to vector<8x8x32xf32>
    %7 = arith.mulf %5, %6 : vector<8x8x32xf32>
    %cst = arith.constant dense<0.000000e+00> : vector<8x8xf32>
    %8 = vector.multi_reduction <add>, %7, %cst [2] : vector<8x8x32xf32> to vector<8x8xf32>
    %cst_3 = arith.constant dense<0xFF800000> : vector<8xf32>
    %9 = vector.multi_reduction <maximumf>, %8, %cst_3 [1] : vector<8x8xf32> to vector<8xf32>
    %10 = vector.shape_cast %9 : vector<8xf32> to vector<8x1xf32>
    %11 = vector.broadcast %10 : vector<8x1xf32> to vector<8x8xf32>
    %12 = arith.subf %8, %11 : vector<8x8xf32>
    %13 = math.exp %12 : vector<8x8xf32>
    %cst_4 = arith.constant dense<0.000000e+00> : vector<8xf32>
    %14 = vector.multi_reduction <add>, %13, %cst_4 [1] : vector<8x8xf32> to vector<8xf32>
    %15 = vector.shape_cast %14 : vector<8xf32> to vector<8x1xf32>
    %16 = tpu.reciprocal %15 {approx = true} : vector<8x1xf32> -> vector<8x1xf32>
    %17 = vector.broadcast %16 : vector<8x1xf32> to vector<8x8xf32>
    %18 = arith.mulf %13, %17 : vector<8x8xf32>
    %19 = vector.shape_cast %18 : vector<8x8xf32> to vector<8x8x1xf32>
    %20 = vector.broadcast %19 : vector<8x8x1xf32> to vector<8x8x32xf32>
    %21 = arith.mulf %20, %5 : vector<8x8x32xf32>
    %cst_5 = arith.constant dense<0.000000e+00> : vector<8x32xf32>
    %22 = vector.multi_reduction <add>, %21, %cst_5 [1] : vector<8x8x32xf32> to vector<8x32xf32>
    %cst_6 = arith.constant dense<0xFF800000> : vector<8x32xf32>
    %23 = vector.multi_reduction <maximumf>, %5, %cst_6 [1] : vector<8x8x32xf32> to vector<8x32xf32>
    %cst_7 = arith.constant dense<0.000000e+00> : vector<8x32xf32>
    %24 = vector.multi_reduction <add>, %5, %cst_7 [1] : vector<8x8x32xf32> to vector<8x32xf32>
    %cst_8 = arith.constant 1.250000e-01 : f32
    %25 = vector.broadcast %cst_8 : f32 to vector<8x32xf32>
    %26 = arith.mulf %24, %25 : vector<8x32xf32>
    %27 = tpu.concatenate %22, %23, %26 in 1 : vector<8x32xf32>, vector<8x32xf32>, vector<8x32xf32> -> vector<8x96xf32>
    %28 = arith.index_cast %3 : i32 to index
    %c0_9 = arith.constant 0 : index
    %29 = vector.load %arg10[%28, %c0_9] : memref<8x96xf32, #tpu.memory_space<vmem>>, vector<8x96xf32>
    tpu.vector_store %arg10[%28, %c0_9], %27 {strides = array<i32>} : memref<8x96xf32, #tpu.memory_space<vmem>>, vector<8x96xf32>,
    %c1_i32 = arith.constant 1 : i32
    %c0_i32_10 = arith.constant 0 : i32
    %c8_i32_11 = arith.constant 8 : i32
    %30 = arith.muli %c0_i32_10, %c8_i32_11 : i32
    %31 = tpu.assume_multiple %30, 8 : i32
    %32 = arith.index_cast %31 : i32 to index
    %c0_12 = arith.constant 0 : index
    %33 = vector.load %arg10[%32, %c0_12] : memref<8x96xf32, #tpu.memory_space<vmem>>, vector<8x96xf32>
    %c0_13 = arith.constant 0 : index
    %c0_14 = arith.constant 0 : index
    %34 = vector.load %arg3[%c0_13, %c0_14] : memref<96x128xf32, #tpu.memory_space<vmem>>, vector<96x128xf32>
    %cst_15 = arith.constant dense<0.000000e+00> : vector<8x128xf32>
    %35 = tpu.matmul %33, %34, %cst_15 {dimension_numbers = #tpu.dot_dimension_numbers<[1], [0], [0], [1], [0, 0, 1, 1], [], []>} : vector<8x96xf32>, vector<96x128xf32>, vector<8x128xf32> -> vector<8x128xf32>
    %c0_16 = arith.constant 0 : index
    %c0_17 = arith.constant 0 : index
    %36 = vector.load %arg4[%c0_16, %c0_17] : memref<1x128xf32, #tpu.memory_space<vmem>>, vector<1x128xf32>
    %37 = vector.broadcast %36 : vector<1x128xf32> to vector<8x128xf32>
    %38 = arith.addf %35, %37 : vector<8x128xf32>
    %cst_18 = arith.constant 0.000000e+00 : f32
    %39 = vector.broadcast %cst_18 : f32 to vector<8x128xf32>
    %40 = arith.maximumf %38, %39 : vector<8x128xf32>
    %c0_19 = arith.constant 0 : index
    %c0_20 = arith.constant 0 : index
    %41 = vector.load %arg5[%c0_19, %c0_20] : memref<128x128xf32, #tpu.memory_space<vmem>>, vector<128x128xf32>
    %cst_21 = arith.constant dense<0.000000e+00> : vector<8x128xf32>
    %42 = tpu.matmul %40, %41, %cst_21 {dimension_numbers = #tpu.dot_dimension_numbers<[1], [0], [0], [1], [0, 0, 1, 1], [], []>} : vector<8x128xf32>, vector<128x128xf32>, vector<8x128xf32> -> vector<8x128xf32>
    %c0_22 = arith.constant 0 : index
    %c0_23 = arith.constant 0 : index
    %43 = vector.load %arg6[%c0_22, %c0_23] : memref<1x128xf32, #tpu.memory_space<vmem>>, vector<1x128xf32>
    %44 = vector.broadcast %43 : vector<1x128xf32> to vector<8x128xf32>
    %45 = arith.addf %42, %44 : vector<8x128xf32>
    %cst_24 = arith.constant 0.000000e+00 : f32
    %46 = vector.broadcast %cst_24 : f32 to vector<8x128xf32>
    %47 = arith.maximumf %45, %46 : vector<8x128xf32>
    %c0_25 = arith.constant 0 : index
    %c0_26 = arith.constant 0 : index
    %48 = vector.load %arg7[%c0_25, %c0_26] : memref<128x128xf32, #tpu.memory_space<vmem>>, vector<128x128xf32>
    %cst_27 = arith.constant dense<0.000000e+00> : vector<8x128xf32>
    %49 = tpu.matmul %47, %48, %cst_27 {dimension_numbers = #tpu.dot_dimension_numbers<[1], [0], [0], [1], [0, 0, 1, 1], [], []>} : vector<8x128xf32>, vector<128x128xf32>, vector<8x128xf32> -> vector<8x128xf32>
    %c0_28 = arith.constant 0 : index
    %c0_29 = arith.constant 0 : index
    %50 = vector.load %arg8[%c0_28, %c0_29] : memref<1x128xf32, #tpu.memory_space<vmem>>, vector<1x128xf32>
    %51 = vector.broadcast %50 : vector<1x128xf32> to vector<8x128xf32>
    %52 = arith.addf %49, %51 : vector<8x128xf32>
    %53 = vector.extract_strided_slice %52 {offsets = [0, 0], sizes = [8, 4], strides = [1, 1]} : vector<8x128xf32> to vector<8x4xf32>
    %54 = arith.index_cast %31 : i32 to index
    %c0_30 = arith.constant 0 : index
    %55 = vector.load %arg9[%54, %c0_30] : memref<8x4xf32, #tpu.memory_space<vmem>>, vector<8x4xf32>
    tpu.vector_store %arg9[%54, %c0_30], %53 {strides = array<i32>} : memref<8x4xf32, #tpu.memory_space<vmem>>, vector<8x4xf32>,
    %c1_i32_31 = arith.constant 1 : i32
    return
  }
  func.func @transform_0(%arg0: i32) -> (i32, i32, i32) {
    %c0_i32 = arith.constant 0 : i32
    %c0_i32_0 = arith.constant 0 : i32
    %c0_i32_1 = arith.constant 0 : i32
    return %arg0, %c0_i32, %c0_i32_0 : i32, i32, i32
  }
  func.func @transform_1(%arg0: i32) -> (i32, i32) {
    %c0_i32 = arith.constant 0 : i32
    %c0_i32_0 = arith.constant 0 : i32
    %c0_i32_1 = arith.constant 0 : i32
    return %c0_i32, %c0_i32_0 : i32, i32
  }
  func.func @transform_2(%arg0: i32) -> (i32, i32) {
    %c0_i32 = arith.constant 0 : i32
    %c0_i32_0 = arith.constant 0 : i32
    %c0_i32_1 = arith.constant 0 : i32
    return %c0_i32, %c0_i32_0 : i32, i32
  }
  func.func @transform_3(%arg0: i32) -> (i32, i32) {
    %c0_i32 = arith.constant 0 : i32
    %c0_i32_0 = arith.constant 0 : i32
    %c0_i32_1 = arith.constant 0 : i32
    return %c0_i32, %c0_i32_0 : i32, i32
  }
  func.func @transform_4(%arg0: i32) -> (i32, i32) {
    %c0_i32 = arith.constant 0 : i32
    %c0_i32_0 = arith.constant 0 : i32
    %c0_i32_1 = arith.constant 0 : i32
    return %c0_i32, %c0_i32_0 : i32, i32
  }
  func.func @transform_5(%arg0: i32) -> (i32, i32) {
    %c0_i32 = arith.constant 0 : i32
    %c0_i32_0 = arith.constant 0 : i32
    %c0_i32_1 = arith.constant 0 : i32
    return %c0_i32, %c0_i32_0 : i32, i32
  }
  func.func @transform_6(%arg0: i32) -> (i32, i32) {
    %c0_i32 = arith.constant 0 : i32
    %c0_i32_0 = arith.constant 0 : i32
    %c0_i32_1 = arith.constant 0 : i32
    return %c0_i32, %c0_i32_0 : i32, i32
  }
  func.func @transform_7(%arg0: i32) -> (i32, i32) {
    %c0_i32 = arith.constant 0 : i32
    %c0_i32_0 = arith.constant 0 : i32
    %c0_i32_1 = arith.constant 0 : i32
    return %c0_i32, %c0_i32_0 : i32, i32
  }
  func.func @transform_8(%arg0: i32) -> (i32, i32) {
    %c0_i32 = arith.constant 0 : i32
    %c0_i32_0 = arith.constant 0 : i32
    return %arg0, %c0_i32 : i32, i32
  }
}

</mosaic_0001>

<bundles_post_ra>
// kernel: tpu_custom_call.1
= control target key start
LH: loop header
LB: loop body
LE: loop exit
PB: predicated region body
PF: predicated region fallthrough
CT: control target
= control target key end

     0   :  { %13 = vsyncpa [#allocation4], 0  ;;  %s1630_s0 = inlined_call_operand.hbm [shape: f32[2,8,32], index: 0, kind: input, shape index: {}]   ;;  %s1631_s1 = inlined_call_operand.vmem [shape: f32[1,32], index: 1, kind: input, shape index: {}]   ;;  %s1632_s2 = inlined_call_operand.hbm [shape: f32[96,128], index: 2, kind: input, shape index: {}]   ;;  %s1633_s3 = inlined_call_operand.vmem [shape: f32[1,128], index: 3, kind: input, shape index: {}]   ;;  %s1634_s4 = inlined_call_operand.hbm [shape: f32[128,128], index: 4, kind: input, shape index: {}]   ;;  %s1635_s5 = inlined_call_operand.vmem [shape: f32[1,128], index: 5, kind: input, shape index: {}]   ;;  %s1636_s6 = inlined_call_operand.hbm [shape: f32[128,128], index: 6, kind: input, shape index: {}]   ;;  %s1637_s7 = inlined_call_operand.vmem [shape: f32[1,128], index: 7, kind: input, shape index: {}]   ;;  %s1638_s8 = inlined_call_operand.hbm [shape: f32[2,4], index: 8, kind: output, shape index: {}]  }
   0x1   :  { %14 = vsyncpa [#allocation7], 0 }
   0x2   :  { %15 = vsyncpa [#allocation10], 0 }
   0x3   :  { %16 = vsyncpa [#allocation5], 0 }
   0x4   :  { %21 = vsyncadd [#allocation4], 768  ;;  %s1259_s27 = smov [#allocation6]   ;;  %s1260_s29 = smov [#allocation3]  }
   0x5   :  { %s36_s28 = sshll.u32 %s1259_s27, 4  ;;  %s22_s30 = sshll.u32 %s1260_s29, 4  ;;  %s37_s28 = int_to_ptr.vmem [resolvable:$true] %s36_s28  ;;  %s23_s30 = int_to_ptr.vmem [resolvable:$true] %s22_s30 }
   0x6   :  { %s1159_s9 = scalar_lea.vmem %s37_s28, 1536  ;;  %p1164_p1 = scmp.lt.s32.totalorder %s37_s28, %s37_s28 }
   0x7   :  { %p1160_p0 = scmp.ne.s32.totalorder %s37_s28, %s1159_s9  ;;  %p1165_p2 = scmp.lt.s32.totalorder %s1159_s9, %s1159_s9 }
   0x9   :  { %p1166_p3 = por %p1165_p2, %p1164_p1 }
   0xb   :  { %p1167_p4 = pnand %p1166_p3, %p1160_p0 }
   0xd   :  { %1170 = shalt.err (!%p1167_p4)
}
   0xe   :  { %s1261_s10 = smov 128   ;;  %s1262_s11 = smov 8  }
   0xf   :  { %42 = dma.hbm_to_vmem [thread:$0]  %s1632_s2, 1536, %s37_s28, [#allocation7], %s1261_s10, %s1261_s10, %s1262_s11  }
  0x10   :  { %s1179_s14 = scalar_lea.vmem %s23_s30, 256  ;;  %s1183_s15 = scalar_lea.vmem %s23_s30, 1024 }
  0x11   :  { %p1180_p5 = scmp.ne.s32.totalorder %s23_s30, %s1179_s14  ;;  %p1184_p6 = scmp.lt.s32.totalorder %s23_s30, %s23_s30 }
  0x12   :  { %p1185_p7 = scmp.lt.s32.totalorder %s1183_s15, %s1179_s14 }
  0x14   :  { %p1186_p8 = por %p1185_p7, %p1184_p6 }
  0x16   :  { %p1187_p9 = pnand %p1186_p8, %p1180_p5 }
  0x18   :  { %1190 = shalt.err (!%p1187_p9)
}
  0x19   :  { %28 = dma.hbm_to_vmem [thread:$0]  %s1630_s0, 256, %s23_s30, [#allocation4], %s1261_s10, %s1261_s10, %s1262_s11  }
  0x1a   :  { %s1263_s18 = smov [#allocation8]   ;;  %s1264_s20 = smov [#allocation9]  }
  0x1b   :  { %s50_s19 = sshll.u32 %s1263_s18, 4  ;;  %s64_s21 = sshll.u32 %s1264_s20, 4  ;;  %s51_s19 = int_to_ptr.vmem [resolvable:$true] %s50_s19  ;;  %s65_s21 = int_to_ptr.vmem [resolvable:$true] %s64_s21 }
  0x1c   :  { %s1199_s2 = scalar_lea.vmem %s51_s19, 2048  ;;  %p1204_p11 = scmp.lt.s32.totalorder %s51_s19, %s51_s19 }
  0x1d   :  { %p1200_p10 = scmp.ne.s32.totalorder %s51_s19, %s1199_s2  ;;  %p1205_p12 = scmp.lt.s32.totalorder %s1199_s2, %s1199_s2 }
  0x1f   :  { %p1206_p13 = por %p1205_p12, %p1204_p11 }
  0x21   :  { %p1207_p0 = pnand %p1206_p13, %p1200_p10 }
  0x23   :  { %1210 = shalt.err (!%p1207_p0)
}
  0x24   :  { %56 = dma.hbm_to_vmem [thread:$0]  %s1634_s4, 2048, %s51_s19, [#allocation7], %s1261_s10, %s1261_s10, %s1262_s11  }
  0x25   :  { %s1219_s0 = scalar_lea.vmem %s65_s21, 2048  ;;  %p1224_p2 = scmp.lt.s32.totalorder %s65_s21, %s65_s21 }
  0x26   :  { %p1220_p1 = scmp.ne.s32.totalorder %s65_s21, %s1219_s0  ;;  %p1225_p3 = scmp.lt.s32.totalorder %s1219_s0, %s1219_s0 }
  0x28   :  { %p1226_p4 = por %p1225_p3, %p1224_p2 }
  0x2a   :  { %p1227_p5 = pnand %p1226_p4, %p1220_p1 }
  0x2c   :  { %1230 = shalt.err (!%p1227_p5)
}
  0x2d   :  { %70 = dma.hbm_to_vmem [thread:$0]  %s1636_s6, 2048, %s65_s21, [#allocation10], %s1261_s10, %s1261_s10, %s1262_s11  }
  0x2e   :  { %1251 = dma.done.wait [#allocation4], 1024  }
  0x2f   :  { %1252 = vsyncadd [#allocation4], 4294966272 }
  0x30   :  { %1253 = dma.done.wait [#allocation7], 3584  }
  0x31   :  { %1254 = vsyncadd [#allocation7], 4294963712 }
  0x32   :  { %1255 = dma.done.wait [#allocation10], 2048  }
  0x33   :  { %1256 = vsyncadd [#allocation10], 4294965248  ;;  %v969_v0 = vld [vmem:[%s1631_s1] ss:$0 sm:$0xff]  ;;  %v1344_v1 = vld [vmem:[#allocation3] sm:$0xff]  ;;  %vm110_vm0 = vcmask 261120   ;;  %v143_v25 = vlaneseq }
  0x34   :  { %v1346_v2 = vld [vmem:[#allocation3 + $0x10] sm:$0xff]  ;;  %v102_v3 = vmul.f32 %v969_v0, %v1344_v1  ;;  %v1350_v5 = vld [vmem:[#allocation3 + $0x8] sm:$0xff]  ;;  %v1355_v9 = vld [vmem:[#allocation3 + $0x18] sm:$0xff]  ;;  %vm177_vm1 = vcmask 1041409   ;;  %vm179_vm2 = vcmask 1042434   ;;  %vm181_vm3 = vcmask 1043459  }
  0x35   :  { %v104_v4 = vmul.f32 %v969_v0, %v1346_v2  ;;  %v103_v8 = vmul.f32 %v969_v0, %v1350_v5  ;;  %v105_v11 = vmul.f32 %v969_v0, %v1355_v9  ;;  %v1360_v13 = vld [vmem:[#allocation3 + $0x20] sm:$0xff]  ;;  %v1363_v15 = vld [vmem:[#allocation3 + $0x28] sm:$0xff]  ;;  %v1367_v18 = vld [vmem:[#allocation3 + $0x30] sm:$0xff]  ;;  %v144_v26 = vand.u32 127, %v143_v25  ;;  %s1266_s1 = smov 32   ;;  %s1267_s6 = smov 64  }
  0x36   :  { %v111_v6 = vsel %vm110_vm0, %v102_v3, 0.0  ;;  %v106_v14 = vmul.f32 %v969_v0, %v1360_v13  ;;  %v107_v17 = vmul.f32 %v969_v0, %v1363_v15  ;;  %v108_v20 = vmul.f32 %v969_v0, %v1367_v18  ;;  %v1371_v21 = vld [vmem:[#allocation3 + $0x38] sm:$0xff] }
  0x37   :  { %v117_v7 = vsel %vm110_vm0, %v104_v4, 0.0  ;;  %112 = vadd.xlane.f32.xlu0 %v111_v6  ;;  %v114_v10 = vsel %vm110_vm0, %v103_v8, 0.0  ;;  %v120_v12 = vsel %vm110_vm0, %v105_v11, 0.0  ;;  %v109_v23 = vmul.f32 %v969_v0, %v1371_v21 }
  0x38   :  { %118 = vadd.xlane.f32.xlu1 %v117_v7  ;;  %v123_v16 = vsel %vm110_vm0, %v106_v14, 0.0  ;;  %v126_v19 = vsel %vm110_vm0, %v107_v17, 0.0  ;;  %v129_v22 = vsel %vm110_vm0, %v108_v20, 0.0  ;;  %v1376_v27 = vshrl.u32 %v143_v25, 7 }
  0x39   :  { %v132_v24 = vsel %vm110_vm0, %v109_v23, 0.0  ;;  %vm183_vm4 = vcmask 1044484   ;;  %vm185_vm5 = vcmask 1045509   ;;  %vm187_vm6 = vcmask 1046534  }
  0x3a   :  { %v1379_v30 = vsub.s32 %v144_v26, %v1376_v27  ;;  %vm189_vm7 = vcmask 1047559   ;;  %vm192_vm8 = vcmask 64512   ;;  %v1265_v53 = vmov 0  }
  0x3b   :  { %115 = vadd.xlane.f32.xlu0 %v114_v10  ;;  %1131 = vset.pattern.permute.xlu1 %v1265_v53  ;;  %v199_v54 = vsub.s32 0, %v1376_v27  ;;  %v203_v55 = vsub.s32 1, %v1376_v27  ;;  %v207_v56 = vsub.s32 2, %v1376_v27  ;;  %v211_v57 = vsub.s32 3, %v1376_v27 }
  0x3c   :  { %121 = vadd.xlane.f32.xlu1 %v120_v12  ;;  %1132 = vset.pattern.permute.xlu0 %v1265_v53  ;;  %v215_v62 = vsub.s32 4, %v1376_v27  ;;  %v219_v8 = vsub.s32 5, %v1376_v27  ;;  %v223_v14 = vsub.s32 6, %v1376_v27  ;;  %v227_v20 = vsub.s32 7, %v1376_v27  ;;  %v679_v27 = vld [vmem:[#allocation6 + $0x58] sm:$0xff] }
  0x3d   :  { %vm1269_vm9 = vmmov 0   ;;  %vm663_vm10 = vcmask 523264   ;;  %vm665_vm11 = vcmask 785408   ;;  %vm948_vm12 = vcmask 31744  }
  0x3f   :  { %124 = vadd.xlane.f32.xlu0 %v123_v16 }
  0x40   :  { %127 = vadd.xlane.f32.xlu1 %v126_v19 }
  0x43   :  { %130 = vadd.xlane.f32.xlu0 %v129_v22 }
  0x44   :  { %133 = vadd.xlane.f32.xlu1 %v132_v24 }
  0xc0   :  { %v113_v28 = vpop.xlane.xlu0 %112 }
  0xc1   :  { %v119_v29 = vpop.xlane.xlu1 %118  ;;  %v148_v33 = vrot.slane %v113_v28, %v1379_v30 }
  0xc2   :  { %v156_v36 = vrot.slane %v119_v29, %v1379_v30 }
  0xc4   :  { %v116_v31 = vpop.xlane.xlu0 %115 }
  0xc5   :  { %v152_v32 = vrot.slane %v116_v31, %v1379_v30  ;;  %v122_v34 = vpop.xlane.xlu1 %121 }
  0xc6   :  { %v160_v37 = vrot.slane %v122_v34, %v1379_v30 }
  0xc7   :  { %v178_v35 = vsel %vm177_vm1, %v152_v32, %v148_v33 }
  0xc8   :  { %v180_v38 = vsel %vm179_vm2, %v156_v36, %v178_v35  ;;  %v125_v39 = vpop.xlane.xlu0 %124 }
  0xc9   :  { %v164_v40 = vrot.slane %v125_v39, %v1379_v30  ;;  %v182_v41 = vsel %vm181_vm3, %v160_v37, %v180_v38  ;;  %v128_v42 = vpop.xlane.xlu1 %127 }
  0xca   :  { %v168_v43 = vrot.slane %v128_v42, %v1379_v30 }
  0xcb   :  { %v184_v44 = vsel %vm183_vm4, %v164_v40, %v182_v41 }
  0xcc   :  { %v131_v45 = vpop.xlane.xlu0 %130  ;;  %v186_v47 = vsel %vm185_vm5, %v168_v43, %v184_v44 }
  0xcd   :  { %v172_v46 = vrot.slane %v131_v45, %v1379_v30  ;;  %v134_v48 = vpop.xlane.xlu1 %133 }
  0xce   :  { %v176_v50 = vrot.slane %v134_v48, %v1379_v30 }
  0xcf   :  { %v188_v49 = vsel %vm187_vm6, %v172_v46, %v186_v47 }
  0xd0   :  { %v190_v51 = vsel %vm189_vm7, %v176_v50, %v188_v49 }
  0xd1   :  { %v193_v52 = vsel %vm192_vm8, %v190_v51, -inf }
  0xd2   :  { %194 = vmax.xlane.f32.xlu0 %v193_v52 }
 0x15b   :  { %v195_v58 = vpop.xlane.xlu0 %194 }
 0x15c   :  { %v200_v59 = vrot.slane %v195_v58, %v199_v54  ;;  %v204_v60 = vrot.slane %v195_v58, %v203_v55  ;;  %v208_v61 = vrot.slane %v195_v58, %v207_v56  ;;  %v212_v63 = vrot.slane %v195_v58, %v211_v57 }
 0x15d   :  { %v216_v10 = vrot.slane %v195_v58, %v215_v62  ;;  %v220_v16 = vrot.slane %v195_v58, %v219_v8  ;;  %v224_v22 = vrot.slane %v195_v58, %v223_v14  ;;  %v228_v25 = vrot.slane %v195_v58, %v227_v20 }
 0x15e   :  { %v237_v0 = vsub.f32 %v113_v28, %v200_v59  ;;  %v238_v3 = vsub.f32 %v116_v31, %v204_v60  ;;  %v239_v4 = vsub.f32 %v119_v29, %v208_v61  ;;  %v240_v11 = vsub.f32 %v122_v34, %v212_v63 }
 0x15f   :  { %v241_v17 = vsub.f32 %v125_v39, %v216_v10  ;;  %v242_v23 = vsub.f32 %v128_v42, %v220_v16  ;;  %v243_v26 = vsub.f32 %v131_v45, %v224_v22  ;;  %v244_v32 = vsub.f32 %v134_v48, %v228_v25 }
 0x160   :  { %v245_v6 = vmul.f32 1.442695, %v237_v0  ;;  %v247_v7 = vmul.f32 1.442695, %v238_v3  ;;  %v249_v12 = vmul.f32 1.442695, %v239_v4 }
 0x161   :  { %v251_v19 = vmul.f32 1.442695, %v240_v11  ;;  %v253_v24 = vmul.f32 1.442695, %v241_v17  ;;  %v255_v28 = vmul.f32 1.442695, %v242_v23 }
 0x162   :  { %1133 = vpow2.f32 %v245_v6  ;;  %v257_v33 = vmul.f32 1.442695, %v243_v26  ;;  %v259_v35 = vmul.f32 1.442695, %v244_v32  ;;  %v490_v11 = vsel %vm110_vm0, %v1344_v1, -inf }
 0x163   :  { %1135 = vpow2.f32 %v247_v7  ;;  %v504_v16 = vsel %vm110_vm0, %v1346_v2, -inf  ;;  %v491_v17 = vrot.slane %v490_v11, 4  ;;  %v518_v26 = vsel %vm110_vm0, %v1360_v13, -inf }
 0x164   :  { %1137 = vpow2.f32 %v249_v12  ;;  %v497_v12 = vsel %vm110_vm0, %v1350_v5, -inf  ;;  %v505_v22 = vrot.slane %v504_v16, 4 }
 0x165   :  { %1139 = vpow2.f32 %v251_v19  ;;  %v498_v19 = vrot.slane %v497_v12, 4 }
 0x166   :  { %1141 = vpow2.f32 %v253_v24  ;;  %v492_v24 = vmax.f32 %v490_v11, %v491_v17 }
 0x167   :  { %1143 = vpow2.f32 %v255_v28  ;;  %v499_v25 = vmax.f32 %v497_v12, %v498_v19  ;;  %v506_v28 = vmax.f32 %v504_v16, %v505_v22 }
 0x168   :  { %1145 = vpow2.f32 %v257_v33  ;;  %v519_v33 = vrot.slane %v518_v26, 4 }
 0x169   :  { %1147 = vpow2.f32 %v259_v35  ;;  %v493_v35 = vrot.slane %v492_v24, 2 }
 0x16f   :  { %v1421_v29 = vpop.eup %1133 }
 0x170   :  { %v1423_v31 = vpop.eup %1135  ;;  %270 = vperm.xlu1 %1131, %v1421_v29  }
 0x171   :  { %273 = vperm.xlu0 %1132, %v1423_v31   ;;  %v1427_v34 = vpop.eup %1137 }
 0x172   :  { %v1430_v36 = vpop.eup %1139 }
 0x173   :  { %v1433_v37 = vpop.eup %1141 }
 0x174   :  { %276 = vperm.xlu1 %1131, %v1427_v34   ;;  %v1436_v38 = vpop.eup %1143 }
 0x175   :  { %v1439_v39 = vpop.eup %1145 }
 0x176   :  { %v1442_v40 = vpop.eup %1147 }
 0x178   :  { %279 = vperm.xlu1 %1131, %v1430_v36  }
 0x17c   :  { %282 = vperm.xlu1 %1131, %v1433_v37  }
 0x180   :  { %285 = vperm.xlu1 %1131, %v1436_v38  }
 0x184   :  { %288 = vperm.xlu1 %1131, %v1439_v39  }
 0x188   :  { %291 = vperm.xlu1 %1131, %v1442_v40  }
 0x1eb   :  { %v271_v41 = vpop.permute.xlu1 %270 }
 0x1ec   :  { %v274_v45 = vpop.permute.xlu0 %273  ;;  %v296_v48 = vrot.slane %v271_v41, %v1379_v30  ;;  %v500_v41 = vrot.slane %v499_v25, 2 }
 0x1ed   :  { %v300_v47 = vrot.slane %v274_v45, %v1379_v30  ;;  %v520_v45 = vmax.f32 %v518_v26, %v519_v33 }
 0x1ef   :  { %v277_v42 = vpop.permute.xlu1 %276  ;;  %v325_v53 = vsel %vm177_vm1, %v300_v47, %v296_v48  ;;  %v494_v47 = vmax.f32 %v492_v24, %v493_v35  ;;  %v501_v48 = vmax.f32 %v499_v25, %v500_v41 }
 0x1f0   :  { %v304_v49 = vrot.slane %v277_v42, %v1379_v30  ;;  %v525_v42 = vsel %vm110_vm0, %v1363_v15, -inf }
 0x1f2   :  { %v326_v59 = vsel %vm179_vm2, %v304_v49, %v325_v53  ;;  %v532_v49 = vsel %vm110_vm0, %v1367_v18, -inf }
 0x1f3   :  { %v280_v43 = vpop.permute.xlu1 %279 }
 0x1f4   :  { %v308_v50 = vrot.slane %v280_v43, %v1379_v30  ;;  %v507_v43 = vrot.slane %v506_v28, 2 }
 0x1f6   :  { %v327_v61 = vsel %vm181_vm3, %v308_v50, %v326_v59  ;;  %v508_v50 = vmax.f32 %v506_v28, %v507_v43  ;;  %v495_v59 = vrot.slane %v494_v47, 1 }
 0x1f7   :  { %v283_v44 = vpop.permute.xlu1 %282 }
 0x1f8   :  { %v312_v51 = vrot.slane %v283_v44, %v1379_v30 }
 0x1fa   :  { %v328_v63 = vsel %vm183_vm4, %v312_v51, %v327_v61  ;;  %v509_v61 = vrot.slane %v508_v50, 1 }
 0x1fb   :  { %v286_v46 = vpop.permute.xlu1 %285 }
 0x1fc   :  { %v316_v58 = vrot.slane %v286_v46, %v1379_v30  ;;  %v526_v46 = vrot.slane %v525_v42, 4  ;;  %v510_v12 = vmax.f32 %v508_v50, %v509_v61  ;;  %v546_v50 = vsel %vm110_vm0, %v1344_v1, 0.0 }
 0x1fd   :  { %v567_v61 = vsel %vm110_vm0, %v1355_v9, 0.0 }
 0x1fe   :  { %v329_v3 = vsel %vm185_vm5, %v316_v58, %v328_v63  ;;  %v527_v53 = vmax.f32 %v525_v42, %v526_v46  ;;  %v533_v58 = vrot.slane %v532_v49, 4  ;;  %v539_v63 = vsel %vm110_vm0, %v1371_v21, -inf }
 0x1ff   :  { %v289_v52 = vpop.permute.xlu1 %288  ;;  %v540_v11 = vrot.slane %v539_v63, 4 }
 0x200   :  { %v320_v60 = vrot.slane %v289_v52, %v1379_v30  ;;  %v521_v52 = vrot.slane %v520_v45, 2 }
 0x201   :  { %v541_v22 = vmax.f32 %v539_v63, %v540_v11 }
 0x202   :  { %v330_v6 = vsel %vm187_vm6, %v320_v60, %v329_v3  ;;  %v502_v60 = vrot.slane %v501_v48, 1  ;;  %v522_v3 = vmax.f32 %v520_v45, %v521_v52 }
 0x203   :  { %v292_v0 = vpop.permute.xlu1 %291 }
 0x204   :  { %v324_v4 = vrot.slane %v292_v0, %v1379_v30  ;;  %v511_v30 = vsel %vm110_vm0, %v1355_v9, -inf  ;;  %v523_v17 = vrot.slane %v522_v3, 1 }
 0x205   :  { %v512_v23 = vrot.slane %v511_v30, 4 }
 0x206   :  { %v331_v7 = vsel %vm189_vm7, %v324_v4, %v330_v6  ;;  %v528_v4 = vrot.slane %v527_v53, 2  ;;  %v534_v6 = vmax.f32 %v532_v49, %v533_v58  ;;  %v524_v24 = vmax.f32 %v522_v3, %v523_v17 }
 0x207   :  { %v333_v10 = vsel %vm192_vm8, %v331_v7, 0.0  ;;  %v513_v32 = vmax.f32 %v511_v30, %v512_v23  ;;  %v496_v7 = vmax.f32 %v494_v47, %v495_v59  ;;  %v547_v58 = vrot.slane %v546_v50, 4 }
 0x208   :  { %334 = vadd.xlane.f32.xlu1 %v333_v10  ;;  %v503_v10 = vmax.f32 %v501_v48, %v502_v60  ;;  %v529_v19 = vmax.f32 %v527_v53, %v528_v4  ;;  %v535_v30 = vrot.slane %v534_v6, 2  ;;  %v560_v53 = vsel %vm110_vm0, %v1346_v2, 0.0 }
 0x209   :  { %v514_v44 = vrot.slane %v513_v32, 2  ;;  %v561_v60 = vrot.slane %v560_v53, 4  ;;  %v548_v63 = vadd.f32 %v547_v58, %v546_v50  ;;  %v568_v4 = vrot.slane %v567_v61, 4 }
 0x20a   :  { %v634_v23 = vsel %vm177_vm1, %v503_v10, %v496_v7  ;;  %v530_v25 = vrot.slane %v529_v19, 1  ;;  %v536_v26 = vmax.f32 %v534_v6, %v535_v30  ;;  %v574_v6 = vsel %vm110_vm0, %v1360_v13, 0.0 }
 0x20b   :  { %v515_v51 = vmax.f32 %v513_v32, %v514_v44  ;;  %v635_v28 = vsel %vm179_vm2, %v510_v12, %v634_v23  ;;  %v542_v32 = vrot.slane %v541_v22, 2  ;;  %v562_v3 = vadd.f32 %v561_v60, %v560_v53 }
 0x20c   :  { %v531_v35 = vmax.f32 %v529_v19, %v530_v25  ;;  %v537_v41 = vrot.slane %v536_v26, 1  ;;  %v549_v7 = vrot.slane %v548_v63, 2  ;;  %v575_v11 = vrot.slane %v574_v6, 4 }
 0x20d   :  { %v516_v0 = vrot.slane %v515_v51, 1  ;;  %v543_v43 = vmax.f32 %v541_v22, %v542_v32  ;;  %v581_v12 = vsel %vm110_vm0, %v1363_v15, 0.0  ;;  %v569_v17 = vadd.f32 %v568_v4, %v567_v61 }
 0x20e   :  { %v538_v44 = vmax.f32 %v536_v26, %v537_v41  ;;  %v550_v30 = vadd.f32 %v549_v7, %v548_v63  ;;  %v582_v23 = vrot.slane %v581_v12, 4  ;;  %v576_v25 = vadd.f32 %v575_v11, %v574_v6 }
 0x20f   :  { %v517_v16 = vmax.f32 %v515_v51, %v516_v0  ;;  %v544_v46 = vrot.slane %v543_v43, 1  ;;  %v553_v51 = vsel %vm110_vm0, %v1350_v5, 0.0  ;;  %v570_v32 = vrot.slane %v569_v17, 2 }
 0x210   :  { %v554_v59 = vrot.slane %v553_v51, 4 }
 0x211   :  { %v636_v33 = vsel %vm181_vm3, %v517_v16, %v635_v28  ;;  %v545_v48 = vmax.f32 %v543_v43, %v544_v46  ;;  %v563_v16 = vrot.slane %v562_v3, 2  ;;  %v551_v43 = vrot.slane %v550_v30, 1 }
 0x212   :  { %v637_v42 = vsel %vm183_vm4, %v524_v24, %v636_v33  ;;  %v555_v0 = vadd.f32 %v554_v59, %v553_v51  ;;  %v588_v24 = vsel %vm110_vm0, %v1367_v18, 0.0  ;;  %v577_v46 = vrot.slane %v576_v25, 2 }
 0x213   :  { %v638_v45 = vsel %vm185_vm5, %v531_v35, %v637_v42  ;;  %v564_v28 = vadd.f32 %v563_v16, %v562_v3  ;;  %v589_v33 = vrot.slane %v588_v24, 4  ;;  %v595_v35 = vsel %vm110_vm0, %v1371_v21, 0.0 }
 0x214   :  { %v639_v47 = vsel %vm187_vm6, %v538_v44, %v638_v45  ;;  %v556_v10 = vrot.slane %v555_v0, 2  ;;  %v583_v45 = vadd.f32 %v582_v23, %v581_v12  ;;  %v578_v58 = vadd.f32 %v577_v46, %v576_v25 }
 0x215   :  { %v640_v49 = vsel %vm189_vm7, %v545_v48, %v639_v47  ;;  %v571_v47 = vadd.f32 %v570_v32, %v569_v17  ;;  %v596_v48 = vrot.slane %v595_v35, 4 }
 0x216   :  { %v557_v22 = vadd.f32 %v556_v10, %v555_v0  ;;  %v584_v53 = vrot.slane %v583_v45, 2 }
 0x217   :  { %v597_v59 = vadd.f32 %v596_v48, %v595_v35 }
 0x218   :  { %v558_v44 = vrot.slane %v557_v22, 1  ;;  %v585_v4 = vadd.f32 %v584_v53, %v583_v45  ;;  %v776_v53 = vld [vmem:[#allocation8 + $0x78] sm:$0xff] }
 0x219   :  { %641 = vrot.lane.b32.xlu1 %v640_v49, %s1266_s1  ;;  %v590_v49 = vadd.f32 %v589_v33, %v588_v24  ;;  %v598_v7 = vrot.slane %v597_v59, 2 }
 0x21a   :  { %v586_v16 = vrot.slane %v585_v4, 1 }
 0x21b   :  { %v591_v0 = vrot.slane %v590_v49, 2 }
 0x291   :  { %v335_v52 = vpop.xlane.xlu1 %334 }
 0x292   :  { %1149 = vrcp.f32 %v335_v52  ;;  %v559_v52 = vadd.f32 %v558_v44, %v557_v22 }
 0x294   :  { %v603_v3 = vmul.f32 0.125, %v559_v52  ;;  %v670_v52 = vld [vmem:[#allocation6 + $0x10] sm:$0xff] }
 0x29f   :  { %v1497_v19 = vpop.eup %1149 }
 0x2a0   :  { %v341_v26 = vrot.slane %v1497_v19, %v199_v54  ;;  %v345_v42 = vrot.slane %v1497_v19, %v203_v55  ;;  %v565_v54 = vrot.slane %v564_v28, 1  ;;  %v349_v51 = vrot.slane %v1497_v19, %v207_v56 }
 0x2a1   :  { %v572_v55 = vrot.slane %v571_v47, 1  ;;  %v353_v63 = vrot.slane %v1497_v19, %v211_v57  ;;  %v579_v56 = vrot.slane %v578_v58, 1  ;;  %v357_v12 = vrot.slane %v1497_v19, %v215_v62 }
 0x2a2   :  { %v378_v41 = vmul.f32 %v1421_v29, %v341_v26  ;;  %v379_v50 = vmul.f32 %v1423_v31, %v345_v42  ;;  %v552_v29 = vadd.f32 %v551_v43, %v550_v30  ;;  %v566_v60 = vadd.f32 %v565_v54, %v564_v28 }
 0x2a3   :  { %v380_v61 = vmul.f32 %v1427_v34, %v349_v51  ;;  %v573_v6 = vadd.f32 %v572_v55, %v571_v47  ;;  %v381_v11 = vmul.f32 %v1430_v36, %v353_v63  ;;  %v592_v34 = vadd.f32 %v591_v0, %v590_v49  ;;  %v674_v49 = vld [vmem:[#allocation6 + $0x30] sm:$0xff]  ;;  %v672_v51 = vld [vmem:[#allocation6 + $0x20] sm:$0xff]  ;;  %v669_v55 = vld [vmem:[#allocation6 + $0x8] sm:$0xff] }
 0x2a4   :  { %388 = vperm.xlu0 %1132, %v378_v41   ;;  %v602_v31 = vmul.f32 0.125, %v552_v29  ;;  %v604_v10 = vmul.f32 0.125, %v566_v60  ;;  %v580_v57 = vadd.f32 %v579_v56, %v578_v58  ;;  %v599_v30 = vadd.f32 %v598_v7, %v597_v59  ;;  %v671_v29 = vld [vmem:[#allocation6 + $0x18] sm:$0xff]  ;;  %v775_v58 = vld [vmem:[#allocation8 + $0x70] sm:$0xff]  ;;  %v774_v59 = vld [vmem:[#allocation8 + $0x68] sm:$0xff] }
 0x2a5   :  { %v605_v22 = vmul.f32 0.125, %v573_v6  ;;  %v382_v23 = vmul.f32 %v1433_v37, %v357_v12  ;;  %v361_v24 = vrot.slane %v1497_v19, %v219_v8  ;;  %v593_v25 = vrot.slane %v592_v34, 1  ;;  %v668_v60 = vld [vmem:[#allocation6] sm:$0xff]  ;;  %v772_v63 = vld [vmem:[#allocation8 + $0x58] sm:$0xff]  ;;  %v771_v0 = vld [vmem:[#allocation8 + $0x50] sm:$0xff] }
 0x2a6   :  { %v652_v17 = vsel %vm177_vm1, %v603_v3, %v602_v31  ;;  %v587_v26 = vadd.f32 %v586_v16, %v585_v4  ;;  %v606_v62 = vmul.f32 0.125, %v580_v57  ;;  %v600_v28 = vrot.slane %v599_v30, 1  ;;  %v770_v31 = vld [vmem:[#allocation8 + $0x48] sm:$0xff]  ;;  %v769_v3 = vld [vmem:[#allocation8 + $0x40] sm:$0xff]  ;;  %v768_v4 = vld [vmem:[#allocation8 + $0x38] sm:$0xff] }
 0x2a7   :  { %v653_v36 = vsel %vm179_vm2, %v604_v10, %v652_v17  ;;  %v383_v33 = vmul.f32 %v1436_v38, %v361_v24  ;;  %v365_v35 = vrot.slane %v1497_v19, %v223_v14  ;;  %v594_v37 = vadd.f32 %v593_v25, %v592_v34  ;;  %v767_v56 = vld [vmem:[#allocation8 + $0x30] sm:$0xff]  ;;  %v766_v6 = vld [vmem:[#allocation8 + $0x28] sm:$0xff]  ;;  %v765_v7 = vld [vmem:[#allocation8 + $0x20] sm:$0xff] }
 0x2a8   :  { %393 = vperm.xlu0 %1132, %v379_v50   ;;  %v654_v32 = vsel %vm181_vm3, %v605_v22, %v653_v36  ;;  %v607_v41 = vmul.f32 0.125, %v587_v26  ;;  %v601_v42 = vadd.f32 %v600_v28, %v599_v30  ;;  %v369_v44 = vrot.slane %v1497_v19, %v227_v20  ;;  %v678_v20 = vld [vmem:[#allocation6 + $0x50] sm:$0xff]  ;;  %v675_v19 = vld [vmem:[#allocation6 + $0x38] sm:$0xff]  ;;  %v673_v50 = vld [vmem:[#allocation6 + $0x28] sm:$0xff] }
 0x2a9   :  { %v655_v8 = vsel %vm183_vm4, %v606_v62, %v654_v32  ;;  %v384_v43 = vmul.f32 %v1439_v39, %v365_v35  ;;  %v608_v45 = vmul.f32 0.125, %v594_v37  ;;  %v1268_v54 = vmov 0.0   ;;  %v677_v39 = vld [vmem:[#allocation6 + $0x48] sm:$0xff]  ;;  %v764_v10 = vld [vmem:[#allocation8 + $0x18] sm:$0xff] }
 0x2aa   :  { %v656_v46 = vsel %vm185_vm5, %v607_v41, %v655_v8  ;;  %v609_v38 = vmul.f32 0.125, %v601_v42  ;;  %v385_v47 = vmul.f32 %v1442_v40, %v369_v44  ;;  %1021 = vmatprep.subr.mxu0 %v1268_v54  ;;  %1048 = vmatprep.subr.mxu1 %v1268_v54  ;;  %v676_v40 = vld [vmem:[#allocation6 + $0x40] sm:$0xff] }
 0x2ab   :  { %v657_v14 = vsel %vm187_vm6, %v608_v45, %v656_v46  ;;  %1022 = vmatpush3.msra.mxu0 %v679_v27  ;;  %1045 = vmatprep.mubr.msk.f32.mxu0 %vm1269_vm9, %v1268_v54 }
 0x2ac   :  { %398 = vperm.xlu0 %1132, %v380_v61   ;;  %v658_v48 = vsel %vm189_vm7, %v609_v38, %v657_v14  ;;  %1023 = vmatprep.subr.mxu0 %v1268_v54  ;;  %v773_v61 = vld [vmem:[#allocation8 + $0x60] sm:$0xff] }
 0x2ad   :  { %1024 = vmatpush3.msra.mxu0 %v678_v20  ;;  %1080 = vmatprep.mubr.msk.f32.mxu1 %vm1269_vm9, %v1268_v54 }
 0x2ae   :  { %1025 = vmatprep.subr.mxu0 %v1268_v54  ;;  %1049 = vmatpush3.msra.mxu1 %v776_v53 }
 0x2af   :  { %1026 = vmatpush3.msra.mxu0 %v677_v39  ;;  %1050 = vmatprep.subr.mxu1 %v1268_v54 }
 0x2b0   :  { %403 = vperm.xlu0 %1132, %v381_v11   ;;  %1027 = vmatprep.subr.mxu0 %v1268_v54 }
 0x2b1   :  { %1028 = vmatpush3.msra.mxu0 %v676_v40  ;;  %1051 = vmatpush3.msra.mxu1 %v775_v58 }
 0x2b2   :  { %1029 = vmatprep.subr.mxu0 %v1268_v54  ;;  %1052 = vmatprep.subr.mxu1 %v1268_v54 }
 0x2b3   :  { %1030 = vmatpush3.msra.mxu0 %v675_v19  ;;  %1053 = vmatpush3.msra.mxu1 %v774_v59 }
 0x2b4   :  { %408 = vperm.xlu0 %1132, %v382_v23   ;;  %1031 = vmatprep.subr.mxu0 %v1268_v54 }
 0x2b5   :  { %1032 = vmatpush3.msra.mxu0 %v674_v49  ;;  %1054 = vmatprep.subr.mxu1 %v1268_v54 }
 0x2b6   :  { %1033 = vmatprep.subr.mxu0 %v1268_v54  ;;  %1055 = vmatpush3.msra.mxu1 %v773_v61 }
 0x2b7   :  { %1034 = vmatpush3.msra.mxu0 %v673_v50  ;;  %1056 = vmatprep.subr.mxu1 %v1268_v54 }
 0x2b8   :  { %413 = vperm.xlu0 %1132, %v383_v33   ;;  %1035 = vmatprep.subr.mxu0 %v1268_v54 }
 0x2b9   :  { %1036 = vmatpush3.msra.mxu0 %v672_v51  ;;  %1057 = vmatpush3.msra.mxu1 %v772_v63 }
 0x2ba   :  { %1037 = vmatprep.subr.mxu0 %v1268_v54  ;;  %1058 = vmatprep.subr.mxu1 %v1268_v54 }
 0x2bb   :  { %1038 = vmatpush3.msra.mxu0 %v671_v29  ;;  %1059 = vmatpush3.msra.mxu1 %v771_v0 }
 0x2bc   :  { %418 = vperm.xlu0 %1132, %v384_v43   ;;  %1039 = vmatprep.subr.mxu0 %v1268_v54 }
 0x2bd   :  { %1040 = vmatpush3.msra.mxu0 %v670_v52  ;;  %1060 = vmatprep.subr.mxu1 %v1268_v54 }
 0x2be   :  { %1041 = vmatprep.subr.mxu0 %v1268_v54  ;;  %1061 = vmatpush3.msra.mxu1 %v770_v31 }
 0x2bf   :  { %1042 = vmatpush3.msra.mxu0 %v669_v55  ;;  %1062 = vmatprep.subr.mxu1 %v1268_v54 }
 0x2c0   :  { %423 = vperm.xlu0 %1132, %v385_v47   ;;  %1043 = vmatprep.subr.mxu0 %v1268_v54 }
 0x2c1   :  { %1044 = vmatpush3.msra.mxu0 %v668_v60  ;;  %1063 = vmatpush3.msra.mxu1 %v769_v3 }
 0x2c2   :  { %1083 = vmatprep.subr.mxu0 %v1268_v54  ;;  %1064 = vmatprep.subr.mxu1 %v1268_v54 }
 0x2c3   :  { %1065 = vmatpush3.msra.mxu1 %v768_v4 }
 0x2c4   :  { %659 = vrot.lane.b32.xlu0 %v658_v48, %s1267_s6  ;;  %1066 = vmatprep.subr.mxu1 %v1268_v54 }
 0x2c5   :  { %1067 = vmatpush3.msra.mxu1 %v767_v56 }
 0x2c6   :  { %1068 = vmatprep.subr.mxu1 %v1268_v54 }
 0x2c7   :  { %1069 = vmatpush3.msra.mxu1 %v766_v6 }
 0x2c8   :  { %1070 = vmatprep.subr.mxu1 %v1268_v54 }
 0x2c9   :  { %1071 = vmatpush3.msra.mxu1 %v765_v7 }
 0x2ca   :  { %1072 = vmatprep.subr.mxu1 %v1268_v54 }
 0x2cb   :  { %1073 = vmatpush3.msra.mxu1 %v764_v10 }
 0x2cc   :  { %1074 = vmatprep.subr.mxu1 %v1268_v54 }
 0x31f   :  { %v389_v11 = vpop.permute.xlu0 %388 }
 0x320   :  { %v426_v17 = vmul.f32 %v389_v11, %v1344_v1 }
 0x322   :  { %v434_v24 = vsel %vm110_vm0, %v426_v17, 0.0 }
 0x323   :  { %v394_v12 = vpop.permute.xlu0 %393  ;;  %v435_v28 = vrot.slane %v434_v24, 4 }
 0x324   :  { %v427_v34 = vmul.f32 %v394_v12, %v1350_v5 }
 0x325   :  { %v436_v37 = vadd.f32 %v435_v28, %v434_v24  ;;  %v642_v28 = vpop.permute.xlu1 %641 }
 0x326   :  { %v441_v30 = vsel %vm110_vm0, %v427_v34, 0.0 }
 0x327   :  { %v399_v16 = vpop.permute.xlu0 %398  ;;  %v442_v36 = vrot.slane %v441_v30, 4  ;;  %v437_v38 = vrot.slane %v436_v37, 2 }
 0x328   :  { %v428_v57 = vmul.f32 %v399_v16, %v1346_v2 }
 0x329   :  { %v443_v33 = vadd.f32 %v442_v36, %v441_v30  ;;  %v438_v49 = vadd.f32 %v437_v38, %v436_v37  ;;  %v763_v37 = vld [vmem:[#allocation8 + $0x10] sm:$0xff]  ;;  %v864_v38 = vld [vmem:[#allocation9 + $0x48] sm:$0xff] }
 0x32a   :  { %v448_v22 = vsel %vm110_vm0, %v428_v57, 0.0  ;;  %1075 = vmatpush3.msra.mxu1 %v763_v37 }
 0x32b   :  { %v404_v23 = vpop.permute.xlu0 %403  ;;  %v449_v26 = vrot.slane %v448_v22, 4  ;;  %1076 = vmatprep.subr.mxu1 %v1268_v54 }
 0x32c   :  { %v429_v25 = vmul.f32 %v404_v23, %v1355_v9  ;;  %v444_v9 = vrot.slane %v443_v33, 2 }
 0x32d   :  { %v450_v2 = vadd.f32 %v449_v26, %v448_v22 }
 0x32e   :  { %v455_v62 = vsel %vm110_vm0, %v429_v25, 0.0  ;;  %v445_v20 = vadd.f32 %v444_v9, %v443_v33  ;;  %v868_v9 = vld [vmem:[#allocation9 + $0x68] sm:$0xff] }
 0x32f   :  { %v456_v5 = vrot.slane %v455_v62, 4  ;;  %v409_v32 = vpop.permute.xlu0 %408  ;;  %v451_v45 = vrot.slane %v450_v2, 2 }
 0x330   :  { %v430_v1 = vmul.f32 %v409_v32, %v1360_v13  ;;  %v446_v58 = vrot.slane %v445_v20, 1 }
 0x331   :  { %v457_v41 = vadd.f32 %v456_v5, %v455_v62  ;;  %v452_v40 = vadd.f32 %v451_v45, %v450_v2  ;;  %v866_v45 = vld [vmem:[#allocation9 + $0x58] sm:$0xff] }
 0x332   :  { %v462_v35 = vsel %vm110_vm0, %v430_v1, 0.0  ;;  %v447_v4 = vadd.f32 %v446_v58, %v445_v20  ;;  %v858_v20 = vld [vmem:[#allocation9 + $0x18] sm:$0xff] }
 0x333   :  { %v463_v8 = vrot.slane %v462_v35, 4  ;;  %v414_v42 = vpop.permute.xlu0 %413  ;;  %v458_v47 = vrot.slane %v457_v41, 2  ;;  %v453_v60 = vrot.slane %v452_v40, 1 }
 0x334   :  { %v431_v43 = vmul.f32 %v414_v42, %v1363_v15  ;;  %v870_v42 = vld [vmem:[#allocation9 + $0x78] sm:$0xff] }
 0x335   :  { %v464_v44 = vadd.f32 %v463_v8, %v462_v35  ;;  %v459_v50 = vadd.f32 %v458_v47, %v457_v41  ;;  %v454_v10 = vadd.f32 %v453_v60, %v452_v40  ;;  %v762_v41 = vld [vmem:[#allocation8 + $0x8] sm:$0xff]  ;;  %v761_v8 = vld [vmem:[#allocation8] sm:$0xff]  ;;  %v973_v60 = vld [vmem:[%s1637_s7] ss:$0 sm:$0xff] }
 0x336   :  { %v469_v46 = vsel %vm110_vm0, %v431_v43, 0.0  ;;  %v869_v43 = vld [vmem:[#allocation9 + $0x70] sm:$0xff]  ;;  %1077 = vmatpush3.msra.mxu1 %v762_v41  ;;  %v863_v47 = vld [vmem:[#allocation9 + $0x40] sm:$0xff] }
 0x337   :  { %v470_v14 = vrot.slane %v469_v46, 4  ;;  %v419_v48 = vpop.permute.xlu0 %418  ;;  %v465_v13 = vrot.slane %v464_v44, 2  ;;  %v460_v63 = vrot.slane %v459_v50, 1  ;;  %1078 = vmatprep.subr.mxu1 %v1268_v54 }
 0x338   :  { %v432_v27 = vmul.f32 %v419_v48, %v1367_v18  ;;  %v439_v18 = vrot.slane %v438_v49, 1  ;;  %1079 = vmatpush3.msra.mxu1 %v761_v8  ;;  %v861_v48 = vld [vmem:[#allocation9 + $0x30] sm:$0xff] }
 0x339   :  { %v471_v39 = vadd.f32 %v470_v14, %v469_v46  ;;  %v466_v52 = vadd.f32 %v465_v13, %v464_v44  ;;  %v461_v12 = vadd.f32 %v460_v63, %v459_v50  ;;  %v867_v44 = vld [vmem:[#allocation9 + $0x60] sm:$0xff]  ;;  %v865_v46 = vld [vmem:[#allocation9 + $0x50] sm:$0xff]  ;;  %v862_v14 = vld [vmem:[#allocation9 + $0x38] sm:$0xff] }
 0x33a   :  { %v476_v19 = vsel %vm110_vm0, %v432_v27, 0.0  ;;  %v440_v11 = vadd.f32 %v439_v18, %v438_v49  ;;  %v860_v13 = vld [vmem:[#allocation9 + $0x28] sm:$0xff]  ;;  %v859_v27 = vld [vmem:[#allocation9 + $0x20] sm:$0xff] }
 0x33b   :  { %v472_v15 = vrot.slane %v471_v39, 2  ;;  %v477_v51 = vrot.slane %v476_v19, 4  ;;  %v424_v29 = vpop.permute.xlu0 %423  ;;  %v467_v3 = vrot.slane %v466_v52, 1 }
 0x33c   :  { %v433_v53 = vmul.f32 %v424_v29, %v1371_v21  ;;  %v618_v17 = vsel %vm177_vm1, %v447_v4, %v440_v11  ;;  %v855_v29 = vld [vmem:[#allocation9] sm:$0xff] }
 0x33d   :  { %v473_v55 = vadd.f32 %v472_v15, %v471_v39  ;;  %v478_v59 = vadd.f32 %v477_v51, %v476_v19  ;;  %v468_v16 = vadd.f32 %v467_v3, %v466_v52  ;;  %v619_v22 = vsel %vm179_vm2, %v454_v10, %v618_v17  ;;  %v970_v39 = vld [vmem:[%s1633_s3] ss:$0 sm:$0xff]  ;;  %v857_v15 = vld [vmem:[#allocation9 + $0x10] sm:$0xff]  ;;  %v856_v51 = vld [vmem:[#allocation9 + $0x8] sm:$0xff] }
 0x33e   :  { %v483_v61 = vsel %vm110_vm0, %v433_v53, 0.0  ;;  %v620_v24 = vsel %vm181_vm3, %v461_v12, %v619_v22  ;;  %v972_v52 = vld [vmem:[%s1635_s5] ss:$0 sm:$0xff] }
 0x33f   :  { %v479_v0 = vrot.slane %v478_v59, 2  ;;  %v484_v31 = vrot.slane %v483_v61, 4  ;;  %v474_v56 = vrot.slane %v473_v55, 1  ;;  %v621_v36 = vsel %vm183_vm4, %v468_v16, %v620_v24  ;;  %v660_v32 = vpop.permute.xlu0 %659 }
 0x341   :  { %v480_v6 = vadd.f32 %v479_v0, %v478_v59  ;;  %v485_v7 = vadd.f32 %v484_v31, %v483_v61  ;;  %v475_v57 = vadd.f32 %v474_v56, %v473_v55 }
 0x343   :  { %v481_v34 = vrot.slane %v480_v6, 1  ;;  %v486_v21 = vrot.slane %v485_v7, 2  ;;  %v622_v62 = vsel %vm185_vm5, %v475_v57, %v621_v36 }
 0x345   :  { %v487_v30 = vadd.f32 %v486_v21, %v485_v7  ;;  %v482_v23 = vadd.f32 %v481_v34, %v480_v6 }
 0x347   :  { %v488_v25 = vrot.slane %v487_v30, 1  ;;  %v623_v5 = vsel %vm187_vm6, %v482_v23, %v622_v62 }
 0x349   :  { %v489_v26 = vadd.f32 %v488_v25, %v487_v30 }
 0x34b   :  { %v624_v1 = vsel %vm189_vm7, %v489_v26, %v623_v5 }
 0x34c   :  { %v662_v33 = vsel %vm110_vm0, %v624_v1, %v642_v28 }
 0x34d   :  { %v664_v2 = vsel %vm663_vm10, %v662_v33, %v660_v32 }
 0x34e   :  { %666 = vst.msk [vmem:[#allocation2] sm:$0xff] %vm665_vm11, %v664_v2 }
 0x355   :  { %v667_v35 = vld [vmem:[#allocation2] sm:$0xff] }
 0x356   :  { %1046 = vmatmul.mubr.msk.f32.vlgmr.msra.gmra.mxu0 %vm665_vm11, %v667_v35 }
 0x357   :  { %1115 = vmatprep.mubr.msk.f32.mxu0 %vm1269_vm9, %v1268_v54  ;;  %1084 = vmatpush3.msra.mxu0 %v870_v42 }
 0x358   :  { %1085 = vmatprep.subr.mxu0 %v1268_v54 }
 0x359   :  { %1086 = vmatpush3.msra.mxu0 %v869_v43 }
 0x35a   :  { %1087 = vmatprep.subr.mxu0 %v1268_v54 }
 0x35b   :  { %1088 = vmatpush3.msra.mxu0 %v868_v9 }
 0x35c   :  { %1089 = vmatprep.subr.mxu0 %v1268_v54 }
 0x35d   :  { %1090 = vmatpush3.msra.mxu0 %v867_v44 }
 0x35e   :  { %1091 = vmatprep.subr.mxu0 %v1268_v54 }
 0x35f   :  { %1092 = vmatpush3.msra.mxu0 %v866_v45 }
 0x360   :  { %1093 = vmatprep.subr.mxu0 %v1268_v54 }
 0x361   :  { %1094 = vmatpush3.msra.mxu0 %v865_v46 }
 0x362   :  { %1095 = vmatprep.subr.mxu0 %v1268_v54 }
 0x363   :  { %1096 = vmatpush3.msra.mxu0 %v864_v38 }
 0x364   :  { %1097 = vmatprep.subr.mxu0 %v1268_v54 }
 0x365   :  { %1098 = vmatpush3.msra.mxu0 %v863_v47 }
 0x366   :  { %1099 = vmatprep.subr.mxu0 %v1268_v54 }
 0x367   :  { %1100 = vmatpush3.msra.mxu0 %v862_v14 }
 0x368   :  { %1101 = vmatprep.subr.mxu0 %v1268_v54 }
 0x369   :  { %1102 = vmatpush3.msra.mxu0 %v861_v48 }
 0x36a   :  { %1103 = vmatprep.subr.mxu0 %v1268_v54 }
 0x36b   :  { %1104 = vmatpush3.msra.mxu0 %v860_v13 }
 0x36c   :  { %1105 = vmatprep.subr.mxu0 %v1268_v54 }
 0x36d   :  { %1106 = vmatpush3.msra.mxu0 %v859_v27 }
 0x36e   :  { %1107 = vmatprep.subr.mxu0 %v1268_v54 }
 0x36f   :  { %1108 = vmatpush3.msra.mxu0 %v858_v20 }
 0x370   :  { %1109 = vmatprep.subr.mxu0 %v1268_v54 }
 0x371   :  { %1110 = vmatpush3.msra.mxu0 %v857_v15 }
 0x372   :  { %1111 = vmatprep.subr.mxu0 %v1268_v54 }
 0x373   :  { %1112 = vmatpush3.msra.mxu0 %v856_v51 }
 0x374   :  { %1113 = vmatprep.subr.mxu0 %v1268_v54 }
 0x375   :  { %1114 = vmatpush3.msra.mxu0 %v855_v29 }
 0x416   :  { %v756_v40 = vpop.f32.mrf.mxu0 }
 0x417   :  { %v757_v19 = vadd.f32 %v970_v39, %v756_v40 }
 0x418   :  { %v1047_v49 = vpop.f32.mrf.mxu0 }
 0x419   :  { %v760_v50 = vmax.f32 %v757_v19, 0.0 }
 0x41b   :  { %1081 = vmatmul.mubr.f32.vlgmr.msra.gmra.mxu1 %v760_v50 }
 0x4db   :  { %v850_v53 = vpop.f32.mrf.mxu1 }
 0x4dc   :  { %v851_v58 = vadd.f32 %v972_v52, %v850_v53 }
 0x4dd   :  { %v1082_v55 = vpop.f32.mrf.mxu1 }
 0x4de   :  { %v854_v59 = vmax.f32 %v851_v58, 0.0 }
 0x4e0   :  { %1116 = vmatmul.mubr.f32.vlgmr.msra.gmra.mxu0 %v854_v59 }
 0x5a0   :  { %v944_v61 = vpop.f32.mrf.mxu0 }
 0x5a1   :  { %v945_v18 = vadd.f32 %v973_v60, %v944_v61 }
 0x5a2   :  { %v1117_v63 = vpop.f32.mrf.mxu0 }
 0x5a3   :  { %949 = vst.msk [vmem:[#allocation11] sm:$0xff] %vm948_vm12, %v945_v18 }
 0x5a4   :  { %954 = vsyncadd [#allocation5], 96  ;;  %s1270_s10 = smov [#allocation11]  }
 0x5a5   :  { %s955_s11 = sshll.u32 %s1270_s10, 4  ;;  %s956_s11 = int_to_ptr.vmem [resolvable:$true] %s955_s11 }
 0x5a6   :  { %s1231_s12 = scalar_lea.vmem %s956_s11, 32  ;;  %s1235_s5 = scalar_lea.vmem %s956_s11, 128 }
 0x5a7   :  { %p1232_p6 = scmp.ne.s32.totalorder %s956_s11, %s1231_s12  ;;  %p1236_p7 = scmp.lt.s32.totalorder %s956_s11, %s956_s11 }
 0x5a8   :  { %p1237_p8 = scmp.lt.s32.totalorder %s1235_s5, %s1231_s12 }
 0x5aa   :  { %p1238_p9 = por %p1237_p8, %p1236_p7 }
 0x5ac   :  { %p1239_p10 = pnand %p1238_p9, %p1232_p6 }
 0x5ae   :  { %1242 = shalt.err (!%p1239_p10)
}
 0x5af   :  { %s1271_s13 = smov 2  }
 0x5b0   :  { %961 = dma.vmem_to_hbm [thread:$0]  %s956_s11, 32, %s1638_s8, [#allocation5], %s1266_s1, %s1266_s1, %s1271_s13  }
 0x5b1   :  { %1257 = dma.done.wait [#allocation5], 128  }
 0x5b2   :  { %1258 = vsyncadd [#allocation5], 4294967168 }
 0x5b3   :  { %965 = vsyncpa [#allocation4], 1 }
 0x5b4   :  { %966 = vsyncpa [#allocation7], 1 }
 0x5b5   :  { %967 = vsyncpa [#allocation10], 1 }
 0x5b6   :  { %968 = vsyncpa [#allocation5], 1 }

</bundles_post_ra>
